<compile_context>
chip_gen: v6e
topology: v6e:2x2x1
jax: 0.10.0
libtpu: 0.0.40
codegen_flags: <defaults>
</compile_context>

<pallas_src>
import functools

import jax
import jax.numpy as jnp
from jax.experimental import pallas as pl
from jax.experimental.pallas import tpu as pltpu


def _round_up(x, m):
    return (x + m - 1) // m * m


# ----------------------------------------------------------------------------
# Kernel: whole-sequence EncoderRNN forward in a single grid step.
# ----------------------------------------------------------------------------
def gru_kernel(tok_ref,      # SMEM (seq,)   int32          (scalar prefetch)
               emb_hbm,      # HBM  (vocab, Hp) param_dtype (memory_space=ANY)
               h0_ref,       # VMEM (1, Hp)  f32
               w_i_ref,      # VMEM (Hp, 3Hp) param_dtype   [W_ir | W_iz | W_in]
               w_h_ref,      # VMEM (Hp, 3Hp) param_dtype   [W_hr | W_hz | W_hn]
               b_x_ref,      # VMEM (1, 3Hp) f32            [b_ir+b_hr | b_iz+b_hz | b_in]
               b_h_ref,      # VMEM (1, 3Hp) f32            [0 | 0 | b_hn]
               out_ref,      # VMEM (seq_pad, Hp) f32       per-step hidden states
               x_scr,        # VMEM (seq_pad, Hp) param_dtype  gathered embeddings
               gx_scr,       # VMEM (seq_pad, 3Hp) f32      hoisted input projection
               h_scr,        # VMEM (1, Hp)  f32            carried hidden state
               sem,          # DMA semaphores (seq,)
               *, seq):
    Hp = h0_ref.shape[-1]

    # ---- Phase 0: gather embedding rows (manual DMA; table never fully in VMEM).
    @pl.loop(0, seq)
    def _(s):
        pltpu.make_async_copy(emb_hbm.at[pl.ds(tok_ref[s], 1), :],
                              x_scr.at[pl.ds(s, 1), :],
                              sem.at[s]).start()

    # Zero the output slab (covers seq_pad > seq padding rows) while DMAs fly.
    out_ref[...] = jnp.zeros_like(out_ref)

    @pl.loop(0, seq)
    def _(s):
        pltpu.make_async_copy(emb_hbm.at[pl.ds(tok_ref[s], 1), :],
                              x_scr.at[pl.ds(s, 1), :],
                              sem.at[s]).wait()

    # ---- Phase 1: hoisted input projection -- one M=seq_pad MXU matmul.
    gx_scr[...] = jnp.dot(x_scr[...], w_i_ref[...],
                          preferred_element_type=jnp.float32) + b_x_ref[...]

    # ---- Phase 2: serial recurrence (in-kernel loop; no per-step grid overhead).
    h_scr[...] = h0_ref[...]

    @pl.loop(0, seq)
    def _(t):
        h = h_scr[...]                                           # (1, Hp) f32
        gx = gx_scr[pl.ds(t, 1), :]                              # (1, 3Hp) f32
        gh = jnp.dot(h.astype(w_h_ref.dtype), w_h_ref[...],
                     preferred_element_type=jnp.float32) + b_h_ref[...]
        # PyTorch GRU:
        #   r = sigmoid(i_r + b_ir + h_r + b_hr)
        #   z = sigmoid(i_z + b_iz + h_z + b_hz)
        #   n = tanh(i_n + b_in + r * (h_n + b_hn))
        #   h' = (1 - z) * n + z * h  ==  n + z * (h - n)
        rz = jax.nn.sigmoid(gx[:, :2 * Hp] + gh[:, :2 * Hp])     # fused r|z
        r = rz[:, :Hp]
        z = rz[:, Hp:]
        n = jnp.tanh(gx[:, 2 * Hp:] + r * gh[:, 2 * Hp:])
        h_new = n + z * (h - n)
        h_scr[...] = h_new
        out_ref[pl.ds(t, 1), :] = h_new


# ----------------------------------------------------------------------------
# Parameter packing (PyTorch nn.GRU convention -> fused, lane-padded operands)
# ----------------------------------------------------------------------------
def prepare_params(embedding, w_ih, w_hh, b_ih, b_hh, lane=128,
                   param_dtype=jnp.float32):
    """embedding: (vocab, H); w_ih/w_hh: (3H, H); b_ih/b_hh: (3H,).

    param_dtype=jnp.bfloat16 halves weight/embedding DMA & VMEM on v6e/v7x;
    keep jnp.float32 (default) for exact parity with the f32 reference.
    """
    vocab, H = embedding.shape
    Hp = _round_up(max(H, lane), lane)

    emb_p = jnp.zeros((vocab, Hp), jnp.float32).at[:, :H].set(embedding)

    def place_w(w):
        dst = jnp.zeros((Hp, 3 * Hp), jnp.float32)
        for g in range(3):  # r, z, n blocks, each lane-aligned at g*Hp
            dst = dst.at[:H, g * Hp:g * Hp + H].set(w[g * H:(g + 1) * H, :].T)
        return dst

    w_i = place_w(w_ih)
    w_h = place_w(w_hh)

    b_x = jnp.zeros((1, 3 * Hp), jnp.float32)
    b_x = b_x.at[0, 0 * Hp:0 * Hp + H].set(b_ih[0 * H:1 * H] + b_hh[0 * H:1 * H])  # r (folded)
    b_x = b_x.at[0, 1 * Hp:1 * Hp + H].set(b_ih[1 * H:2 * H] + b_hh[1 * H:2 * H])  # z (folded)
    b_x = b_x.at[0, 2 * Hp:2 * Hp + H].set(b_ih[2 * H:3 * H])                      # n (input)
    b_h = jnp.zeros((1, 3 * Hp), jnp.float32)
    b_h = b_h.at[0, 2 * Hp:2 * Hp + H].set(b_hh[2 * H:3 * H])                      # n (hidden)

    return dict(H=H, Hp=Hp,
                emb=emb_p.astype(param_dtype),
                w_i=w_i.astype(param_dtype),
                w_h=w_h.astype(param_dtype),
                b_x=b_x, b_h=b_h)


# ----------------------------------------------------------------------------
# Wrappers
# ----------------------------------------------------------------------------
def encoder_rnn_forward_seq(tokens, hidden, kp):
    """Run the GRU over a whole token sequence in ONE pallas_call.

    tokens: (seq,) int32; hidden: (1, 1, H) f32.
    Returns (output (seq, 1, H), hidden_n (1, 1, H)) -- PyTorch GRU semantics.
    """
    seq = int(tokens.shape[0])
    H, Hp = kp["H"], kp["Hp"]
    seq_pad = _round_up(seq, 8)
    pdt = kp["emb"].dtype

    # h0 zero-padded into lanes [H, Hp): required so padded lanes stay 0.
    h0 = jnp.zeros((1, Hp), jnp.float32).at[:, :H].set(
        hidden.reshape(1, H).astype(jnp.float32))

    grid_spec = pltpu.PrefetchScalarGridSpec(
        num_scalar_prefetch=1,
        grid=(1,),   # single step: all pipelining is done inside the kernel
        in_specs=[
            pl.BlockSpec(memory_space=pl.ANY),                   # embedding (HBM)
            pl.BlockSpec((1, Hp), lambda i, tok: (0, 0)),        # h0
            pl.BlockSpec((Hp, 3 * Hp), lambda i, tok: (0, 0)),   # W_i
            pl.BlockSpec((Hp, 3 * Hp), lambda i, tok: (0, 0)),   # W_h
            pl.BlockSpec((1, 3 * Hp), lambda i, tok: (0, 0)),    # b_x
            pl.BlockSpec((1, 3 * Hp), lambda i, tok: (0, 0)),    # b_h
        ],
        out_specs=pl.BlockSpec((seq_pad, Hp), lambda i, tok: (0, 0)),
        scratch_shapes=[
            pltpu.VMEM((seq_pad, Hp), pdt),             # gathered embeddings
            pltpu.VMEM((seq_pad, 3 * Hp), jnp.float32),  # X_proj
            pltpu.VMEM((1, Hp), jnp.float32),            # hidden carry
            pltpu.SemaphoreType.DMA((seq,)),             # per-row gather sems
        ],
    )

    # Explicit VMEM budget (v5e's scoped default is only 16 MiB at large H).
    itemsize = jnp.dtype(pdt).itemsize
    vmem_est = (2 * Hp * 3 * Hp * itemsize * 2      # W_i, W_h (worst-case x2 buffers)
                + seq_pad * Hp * itemsize           # x_scr
                + seq_pad * 3 * Hp * 4              # gx_scr
                + 2 * seq_pad * Hp * 4              # output slab
                + 8 * 3 * Hp * 4 + 8 * Hp * 4)      # biases / h0 / h_scr
    vmem_limit = int(min(64 * 2 ** 20, max(16 * 2 ** 20, 2 * vmem_est)))

    out = pl.pallas_call(
        functools.partial(gru_kernel, seq=seq),
        out_shape=jax.ShapeDtypeStruct((seq_pad, Hp), jnp.float32),
        grid_spec=grid_spec,
        compiler_params=pltpu.CompilerParams(
            dimension_semantics=("arbitrary",),
            vmem_limit_bytes=vmem_limit),
    )(tokens.astype(jnp.int32), kp["emb"], h0,
      kp["w_i"], kp["w_h"], kp["b_x"], kp["b_h"])

    out_h = out[:seq, :H]
    return out_h.reshape(seq, 1, H), out_h[seq - 1:seq].reshape(1, 1, H)


def encoder_rnn_forward(token_id, hidden, kp):
    """Exact EncoderRNN.forward(input, hidden): one token, returns
    (output (1,1,H), hidden (1,1,H)).
    NOTE: for decode loops, prefer passing all available tokens to
    encoder_rnn_forward_seq so weights are not re-DMA'd per token."""
    tokens = jnp.asarray(token_id, jnp.int32).reshape(1)
    return encoder_rnn_forward_seq(tokens, hidden, kp)


# ----------------------------------------------------------------------------
# Pure-JAX reference (PyTorch GRU semantics)
# ----------------------------------------------------------------------------
def reference_gru_seq(tokens, hidden, embedding, w_ih, w_hh, b_ih, b_hh):
    H = embedding.shape[1]
    h = hidden.reshape(1, H).astype(jnp.float32)
    outs = []
    for i in range(int(tokens.shape[0])):
        x = embedding[tokens[i]].reshape(1, H)
        gi = x @ w_ih.T + b_ih
        gh = h @ w_hh.T + b_hh
        i_r, i_z, i_n = gi[:, :H], gi[:, H:2 * H], gi[:, 2 * H:]
        h_r, h_z, h_n = gh[:, :H], gh[:, H:2 * H], gh[:, 2 * H:]
        r = jax.nn.sigmoid(i_r + h_r)
        z = jax.nn.sigmoid(i_z + h_z)
        n = jnp.tanh(i_n + r * h_n)
        h = (1.0 - z) * n + z * h
        outs.append(h)
    return jnp.stack(outs, axis=0), h.reshape(1, 1, H)   # (seq,1,H), (1,1,H)


# ----------------------------------------------------------------------------
if __name__ == "__main__":
    input_size = 16     # vocab
    hidden_size = 32
    seq_len = 8

    key = jax.random.PRNGKey(0)
    k_emb, k_wih, k_whh, k_bih, k_bhh, k_h, k_tok = jax.random.split(key, 7)
    bound = 1.0 / float(hidden_size) ** 0.5

    embedding = jax.random.normal(k_emb, (input_size, hidden_size), jnp.float32)
    w_ih = jax.random.uniform(k_wih, (3 * hidden_size, hidden_size), jnp.float32, -bound, bound)
    w_hh = jax.random.uniform(k_whh, (3 * hidden_size, hidden_size), jnp.float32, -bound, bound)
    b_ih = jax.random.uniform(k_bih, (3 * hidden_size,), jnp.float32, -bound, bound)
    b_hh = jax.random.uniform(k_bhh, (3 * hidden_size,), jnp.float32, -bound, bound)

    hidden0 = jax.random.normal(k_h, (1, 1, hidden_size), jnp.float32)
    tokens = jax.random.randint(k_tok, (seq_len,), 0, input_size, jnp.int32)

    # f32 parameters: exact parity with the f32 PyTorch/JAX reference.
    kp_f32 = prepare_params(embedding, w_ih, w_hh, b_ih, b_hh)

    # (a) single-token call -- matches EncoderRNN.forward semantics exactly.
    out1, hn1 = encoder_rnn_forward(tokens[0], hidden0, kp_f32)
    # (b) whole sequence in one pallas_call (single grid step, in-kernel loop).
    out_seq, hn_seq = encoder_rnn_forward_seq(tokens, hidden0, kp_f32)

    # (c) bf16 parameter storage (v6e/v7x footprint/bandwidth win); f32 gate math.
    kp_bf16 = prepare_params(embedding, w_ih, w_hh, b_ih, b_hh,
                             param_dtype=jnp.bfloat16)
    out_bf16, hn_bf16 = encoder_rnn_forward_seq(tokens, hidden0, kp_bf16)

    out1, hn1, out_seq, hn_seq, out_bf16, hn_bf16 = jax.block_until_ready(
        (out1, hn1, out_seq, hn_seq, out_bf16, hn_bf16))

    ref_out, ref_hn = reference_gru_seq(tokens, hidden0, embedding,
                                        w_ih, w_hh, b_ih, b_hh)

    assert out1.shape == (1, 1, hidden_size) and hn1.shape == (1, 1, hidden_size)
    assert out_seq.shape == (seq_len, 1, hidden_size)
    assert jnp.allclose(out1, ref_out[:1], atol=1e-4, rtol=1e-4)
    assert jnp.allclose(hn1, ref_out[:1], atol=1e-4, rtol=1e-4)
    assert jnp.allclose(out_seq, ref_out, atol=1e-4, rtol=1e-4)
    assert jnp.allclose(hn_seq, ref_hn, atol=1e-4, rtol=1e-4)
    # bf16 weights legitimately diverge from the f32 reference; loose bound only.
    assert bool(jnp.all(jnp.isfinite(out_bf16)))
    assert float(jnp.max(jnp.abs(out_bf16 - ref_out))) < 0.15

    print("KERNEL_OK")
</pallas_src>

<mosaic_0001>
module attributes {stable_mosaic.version = 11 : i64} {
  func.func @gru_kernel(%arg0: i32, %arg1: memref<1xi32, #tpu.memory_space<smem>>, %arg2: memref<16x128xf32, #tpu.memory_space<any>>, %arg3: memref<1x128xf32, #tpu.memory_space<vmem>>, %arg4: memref<128x384xf32, #tpu.memory_space<vmem>>, %arg5: memref<128x384xf32, #tpu.memory_space<vmem>>, %arg6: memref<1x384xf32, #tpu.memory_space<vmem>>, %arg7: memref<1x384xf32, #tpu.memory_space<vmem>>, %arg8: memref<8x128xf32, #tpu.memory_space<vmem>>, %arg9: memref<8x128xf32, #tpu.memory_space<vmem>>, %arg10: memref<8x384xf32, #tpu.memory_space<vmem>>, %arg11: memref<1x128xf32, #tpu.memory_space<vmem>>, %arg12: memref<1x!tpu.dma_semaphore, #tpu.memory_space<semaphore_mem>>) attributes {dimension_semantics = [#tpu.dimension_semantics<arbitrary>], iteration_bounds = array<i64: 1>, scalar_prefetch = 1 : i64, scratch_operands = 4 : i64, tpu.core_type = #tpu.core_type<tc>, window_params = [{}, {pipeline_mode = #tpu.pipeline_mode<synchronous>, transform_indices = @transform_1, window_bounds = array<i64: 1, 128>}, {pipeline_mode = #tpu.pipeline_mode<synchronous>, transform_indices = @transform_2, window_bounds = array<i64: 128, 384>}, {pipeline_mode = #tpu.pipeline_mode<synchronous>, transform_indices = @transform_3, window_bounds = array<i64: 128, 384>}, {pipeline_mode = #tpu.pipeline_mode<synchronous>, transform_indices = @transform_4, window_bounds = array<i64: 1, 384>}, {pipeline_mode = #tpu.pipeline_mode<synchronous>, transform_indices = @transform_5, window_bounds = array<i64: 1, 384>}, {pipeline_mode = #tpu.pipeline_mode<synchronous>, transform_indices = @transform_6, window_bounds = array<i64: 8, 128>}]} {
    %c0_i32 = arith.constant 0 : i32
    %c1_i32 = arith.constant 1 : i32
    %0 = arith.muli %c0_i32, %c1_i32 : i32
    %c0_i32_0 = arith.constant 0 : i32
    %1 = arith.addi %c0_i32_0, %0 : i32
    %2 = arith.index_cast %1 : i32 to index
    %3 = memref.load %arg1[%2] : memref<1xi32, #tpu.memory_space<smem>>
    %c0_i32_1 = arith.constant 0 : i32
    %4 = tpu.memref_slice %arg2[%3, %c0_i32_1] : memref<16x128xf32, #tpu.memory_space<any>> -> memref<1x128xf32, #tpu.memory_space<any>>
    %c0_i32_2 = arith.constant 0 : i32
    %5 = tpu.memref_slice %arg9[%1, %c0_i32_2] : memref<8x128xf32, #tpu.memory_space<vmem>> -> memref<1x128xf32, #tpu.memory_space<vmem>>
    %6 = tpu.memref_slice %arg12[%1] : memref<1x!tpu.dma_semaphore, #tpu.memory_space<semaphore_mem>> -> memref<1x!tpu.dma_semaphore, #tpu.memory_space<semaphore_mem>>
    %7 = tpu.memref_squeeze %6 : memref<1x!tpu.dma_semaphore, #tpu.memory_space<semaphore_mem>> -> memref<!tpu.dma_semaphore, #tpu.memory_space<semaphore_mem>>
    tpu.enqueue_dma source(%4 : memref<1x128xf32, #tpu.memory_space<any>>) target(%5 : memref<1x128xf32, #tpu.memory_space<vmem>>) target_semaphore(%7 : memref<!tpu.dma_semaphore, #tpu.memory_space<semaphore_mem>>)
    %c1_i32_3 = arith.constant 1 : i32
    %cst = arith.constant 0.000000e+00 : f32
    %8 = vector.broadcast %cst : f32 to vector<8x128xf32>
    %c0 = arith.constant 0 : index
    %c0_4 = arith.constant 0 : index
    %9 = vector.load %arg8[%c0, %c0_4] : memref<8x128xf32, #tpu.memory_space<vmem>>, vector<8x128xf32>
    tpu.vector_store %arg8[%c0, %c0_4], %8 {strides = array<i32>} : memref<8x128xf32, #tpu.memory_space<vmem>>, vector<8x128xf32>,
    %c0_i32_5 = arith.constant 0 : i32
    %c1_i32_6 = arith.constant 1 : i32
    %10 = arith.muli %c0_i32_5, %c1_i32_6 : i32
    %c0_i32_7 = arith.constant 0 : i32
    %11 = arith.addi %c0_i32_7, %10 : i32
    %12 = arith.index_cast %11 : i32 to index
    %13 = memref.load %arg1[%12] : memref<1xi32, #tpu.memory_space<smem>>
    %c0_i32_8 = arith.constant 0 : i32
    %14 = tpu.memref_slice %arg2[%13, %c0_i32_8] : memref<16x128xf32, #tpu.memory_space<any>> -> memref<1x128xf32, #tpu.memory_space<any>>
    %c0_i32_9 = arith.constant 0 : i32
    %15 = tpu.memref_slice %arg9[%11, %c0_i32_9] : memref<8x128xf32, #tpu.memory_space<vmem>> -> memref<1x128xf32, #tpu.memory_space<vmem>>
    %16 = tpu.memref_slice %arg12[%11] : memref<1x!tpu.dma_semaphore, #tpu.memory_space<semaphore_mem>> -> memref<1x!tpu.dma_semaphore, #tpu.memory_space<semaphore_mem>>
    %17 = tpu.memref_squeeze %16 : memref<1x!tpu.dma_semaphore, #tpu.memory_space<semaphore_mem>> -> memref<!tpu.dma_semaphore, #tpu.memory_space<semaphore_mem>>
    tpu.wait_dma2 semaphore(%17 : memref<!tpu.dma_semaphore, #tpu.memory_space<semaphore_mem>>) src(%14 : memref<1x128xf32, #tpu.memory_space<any>>) dst(%15 : memref<1x128xf32, #tpu.memory_space<vmem>>)
    %c1_i32_10 = arith.constant 1 : i32
    %c0_11 = arith.constant 0 : index
    %c0_12 = arith.constant 0 : index
    %18 = vector.load %arg9[%c0_11, %c0_12] : memref<8x128xf32, #tpu.memory_space<vmem>>, vector<8x128xf32>
    %c0_13 = arith.constant 0 : index
    %c0_14 = arith.constant 0 : index
    %19 = vector.load %arg4[%c0_13, %c0_14] : memref<128x384xf32, #tpu.memory_space<vmem>>, vector<128x384xf32>
    %cst_15 = arith.constant dense<0.000000e+00> : vector<8x384xf32>
    %20 = tpu.matmul %18, %19, %cst_15 {dimension_numbers = #tpu.dot_dimension_numbers<[1], [0], [0], [1], [0, 0, 1, 1], [], []>} : vector<8x128xf32>, vector<128x384xf32>, vector<8x384xf32> -> vector<8x384xf32>
    %c0_16 = arith.constant 0 : index
    %c0_17 = arith.constant 0 : index
    %21 = vector.load %arg6[%c0_16, %c0_17] : memref<1x384xf32, #tpu.memory_space<vmem>>, vector<1x384xf32>
    %22 = vector.broadcast %21 : vector<1x384xf32> to vector<8x384xf32>
    %23 = arith.addf %20, %22 : vector<8x384xf32>
    %c0_18 = arith.constant 0 : index
    %c0_19 = arith.constant 0 : index
    %24 = vector.load %arg10[%c0_18, %c0_19] : memref<8x384xf32, #tpu.memory_space<vmem>>, vector<8x384xf32>
    tpu.vector_store %arg10[%c0_18, %c0_19], %23 {strides = array<i32>} : memref<8x384xf32, #tpu.memory_space<vmem>>, vector<8x384xf32>,
    %c0_20 = arith.constant 0 : index
    %c0_21 = arith.constant 0 : index
    %25 = vector.load %arg3[%c0_20, %c0_21] : memref<1x128xf32, #tpu.memory_space<vmem>>, vector<1x128xf32>
    %c0_22 = arith.constant 0 : index
    %c0_23 = arith.constant 0 : index
    %26 = vector.load %arg11[%c0_22, %c0_23] : memref<1x128xf32, #tpu.memory_space<vmem>>, vector<1x128xf32>
    tpu.vector_store %arg11[%c0_22, %c0_23], %25 {strides = array<i32>} : memref<1x128xf32, #tpu.memory_space<vmem>>, vector<1x128xf32>,
    %c0_i32_24 = arith.constant 0 : i32
    %c1_i32_25 = arith.constant 1 : i32
    %27 = arith.muli %c0_i32_24, %c1_i32_25 : i32
    %c0_i32_26 = arith.constant 0 : i32
    %28 = arith.addi %c0_i32_26, %27 : i32
    %c0_27 = arith.constant 0 : index
    %c0_28 = arith.constant 0 : index
    %29 = vector.load %arg11[%c0_27, %c0_28] : memref<1x128xf32, #tpu.memory_space<vmem>>, vector<1x128xf32>
    %30 = arith.index_cast %28 : i32 to index
    %c0_29 = arith.constant 0 : index
    %31 = vector.load %arg10[%30, %c0_29] : memref<8x384xf32, #tpu.memory_space<vmem>>, vector<1x384xf32>
    %c0_30 = arith.constant 0 : index
    %c0_31 = arith.constant 0 : index
    %32 = vector.load %arg5[%c0_30, %c0_31] : memref<128x384xf32, #tpu.memory_space<vmem>>, vector<128x384xf32>
    %cst_32 = arith.constant dense<0.000000e+00> : vector<1x384xf32>
    %33 = tpu.matmul %29, %32, %cst_32 {dimension_numbers = #tpu.dot_dimension_numbers<[1], [0], [0], [1], [0, 0, 1, 1], [], []>} : vector<1x128xf32>, vector<128x384xf32>, vector<1x384xf32> -> vector<1x384xf32>
    %c0_33 = arith.constant 0 : index
    %c0_34 = arith.constant 0 : index
    %34 = vector.load %arg7[%c0_33, %c0_34] : memref<1x384xf32, #tpu.memory_space<vmem>>, vector<1x384xf32>
    %35 = arith.addf %33, %34 : vector<1x384xf32>
    %36 = vector.extract_strided_slice %31 {offsets = [0, 0], sizes = [1, 256], strides = [1, 1]} : vector<1x384xf32> to vector<1x256xf32>
    %37 = vector.extract_strided_slice %35 {offsets = [0, 0], sizes = [1, 256], strides = [1, 1]} : vector<1x384xf32> to vector<1x256xf32>
    %38 = arith.addf %36, %37 : vector<1x256xf32>
    %39 = arith.negf %38 : vector<1x256xf32>
    %40 = math.exp %39 : vector<1x256xf32>
    %cst_35 = arith.constant 1.000000e+00 : f32
    %41 = vector.broadcast %cst_35 : f32 to vector<1x256xf32>
    %42 = arith.addf %41, %40 : vector<1x256xf32>
    %43 = arith.divf %41, %42 : vector<1x256xf32>
    %44 = vector.extract_strided_slice %43 {offsets = [0, 0], sizes = [1, 128], strides = [1, 1]} : vector<1x256xf32> to vector<1x128xf32>
    %45 = vector.extract_strided_slice %43 {offsets = [0, 128], sizes = [1, 128], strides = [1, 1]} : vector<1x256xf32> to vector<1x128xf32>
    %46 = vector.extract_strided_slice %31 {offsets = [0, 256], sizes = [1, 128], strides = [1, 1]} : vector<1x384xf32> to vector<1x128xf32>
    %47 = vector.extract_strided_slice %35 {offsets = [0, 256], sizes = [1, 128], strides = [1, 1]} : vector<1x384xf32> to vector<1x128xf32>
    %48 = arith.mulf %44, %47 : vector<1x128xf32>
    %49 = arith.addf %46, %48 : vector<1x128xf32>
    %50 = math.tanh %49 : vector<1x128xf32>
    %51 = arith.subf %29, %50 : vector<1x128xf32>
    %52 = arith.mulf %45, %51 : vector<1x128xf32>
    %53 = arith.addf %50, %52 : vector<1x128xf32>
    %c0_36 = arith.constant 0 : index
    %c0_37 = arith.constant 0 : index
    %54 = vector.load %arg11[%c0_36, %c0_37] : memref<1x128xf32, #tpu.memory_space<vmem>>, vector<1x128xf32>
    tpu.vector_store %arg11[%c0_36, %c0_37], %53 {strides = array<i32>} : memref<1x128xf32, #tpu.memory_space<vmem>>, vector<1x128xf32>,
    %55 = arith.index_cast %28 : i32 to index
    %c0_38 = arith.constant 0 : index
    %56 = vector.load %arg8[%55, %c0_38] : memref<8x128xf32, #tpu.memory_space<vmem>>, vector<1x128xf32>
    tpu.vector_store %arg8[%55, %c0_38], %53 {strides = array<i32>} : memref<8x128xf32, #tpu.memory_space<vmem>>, vector<1x128xf32>,
    %c1_i32_39 = arith.constant 1 : i32
    return
  }
  func.func @transform_1(%arg0: i32, %arg1: memref<1xi32, #tpu.memory_space<smem>>) -> (i32, i32) {
    %c0_i32 = arith.constant 0 : i32
    %c0_i32_0 = arith.constant 0 : i32
    %c0_i32_1 = arith.constant 0 : i32
    return %c0_i32, %c0_i32_0 : i32, i32
  }
  func.func @transform_2(%arg0: i32, %arg1: memref<1xi32, #tpu.memory_space<smem>>) -> (i32, i32) {
    %c0_i32 = arith.constant 0 : i32
    %c0_i32_0 = arith.constant 0 : i32
    %c0_i32_1 = arith.constant 0 : i32
    return %c0_i32, %c0_i32_0 : i32, i32
  }
  func.func @transform_3(%arg0: i32, %arg1: memref<1xi32, #tpu.memory_space<smem>>) -> (i32, i32) {
    %c0_i32 = arith.constant 0 : i32
    %c0_i32_0 = arith.constant 0 : i32
    %c0_i32_1 = arith.constant 0 : i32
    return %c0_i32, %c0_i32_0 : i32, i32
  }
  func.func @transform_4(%arg0: i32, %arg1: memref<1xi32, #tpu.memory_space<smem>>) -> (i32, i32) {
    %c0_i32 = arith.constant 0 : i32
    %c0_i32_0 = arith.constant 0 : i32
    %c0_i32_1 = arith.constant 0 : i32
    return %c0_i32, %c0_i32_0 : i32, i32
  }
  func.func @transform_5(%arg0: i32, %arg1: memref<1xi32, #tpu.memory_space<smem>>) -> (i32, i32) {
    %c0_i32 = arith.constant 0 : i32
    %c0_i32_0 = arith.constant 0 : i32
    %c0_i32_1 = arith.constant 0 : i32
    return %c0_i32, %c0_i32_0 : i32, i32
  }
  func.func @transform_6(%arg0: i32, %arg1: memref<1xi32, #tpu.memory_space<smem>>) -> (i32, i32) {
    %c0_i32 = arith.constant 0 : i32
    %c0_i32_0 = arith.constant 0 : i32
    %c0_i32_1 = arith.constant 0 : i32
    return %c0_i32, %c0_i32_0 : i32, i32
  }
}

</mosaic_0001>

<bundles_post_ra>
// kernel: tpu_custom_call.1
= control target key start
LH: loop header
LB: loop body
LE: loop exit
PB: predicated region body
PF: predicated region fallthrough
CT: control target
= control target key end

     0   :  { %13 = vsyncpa [#allocation9], 0  ;;  %s889_s0 = inlined_call_operand.<no memory space> [shape: s32[1], index: 0, kind: input, shape index: {}]   ;;  %s890_s1 = inlined_call_operand.hbm [shape: f32[16,128], index: 1, kind: input, shape index: {}]   ;;  %s891_s2 = inlined_call_operand.vmem [shape: f32[1,128], index: 2, kind: input, shape index: {}]   ;;  %s892_s3 = inlined_call_operand.hbm [shape: f32[128,384], index: 3, kind: input, shape index: {}]   ;;  %s893_s4 = inlined_call_operand.hbm [shape: f32[128,384], index: 4, kind: input, shape index: {}]   ;;  %s894_s5 = inlined_call_operand.vmem [shape: f32[1,384], index: 5, kind: input, shape index: {}]   ;;  %s895_s6 = inlined_call_operand.vmem [shape: f32[1,384], index: 6, kind: input, shape index: {}]   ;;  %s896_s7 = inlined_call_operand.hbm [shape: f32[8,128], index: 7, kind: output, shape index: {}]  }
   0x1   :  { %14 = vsyncpa [#allocation12], 0 }
   0x2   :  { %15 = vsyncpa [#allocation10], 0  ;;  %s766_s24 = smov [#allocation8]  }
   0x3   :  { %s23_s25 = sshll.u32 %s766_s24, 4  ;;  %s24_s25 = int_to_ptr.vmem [resolvable:$true] %s23_s25 }
   0x4   :  { %s684_s26 = scalar_lea.vmem %s24_s25, 6144  ;;  %p689_p1 = scmp.lt.s32.totalorder %s24_s25, %s24_s25 }
   0x5   :  { %p685_p0 = scmp.ne.s32.totalorder %s24_s25, %s684_s26  ;;  %p690_p2 = scmp.lt.s32.totalorder %s684_s26, %s684_s26 }
   0x7   :  { %p691_p3 = por %p690_p2, %p689_p1 }
   0x9   :  { %p692_p4 = pnand %p691_p3, %p685_p0 }
   0xb   :  { %695 = shalt.err (!%p692_p4)
}
   0xc   :  { %s767_s27 = smov 384   ;;  %s768_s28 = smov 24  }
   0xd   :  { %29 = dma.hbm_to_vmem [thread:$0]  %s892_s3, 6144, %s24_s25, [#allocation9], %s767_s27, %s767_s27, %s768_s28  }
   0xe   :  { %s769_s8 = smov [#allocation11]  }
   0xf   :  { %s35_s9 = sshll.u32 %s769_s8, 4  ;;  %s36_s9 = int_to_ptr.vmem [resolvable:$true] %s35_s9 }
  0x10   :  { %s704_s10 = scalar_lea.vmem %s36_s9, 6144  ;;  %p709_p6 = scmp.lt.s32.totalorder %s36_s9, %s36_s9 }
  0x11   :  { %p705_p5 = scmp.ne.s32.totalorder %s36_s9, %s704_s10  ;;  %p710_p7 = scmp.lt.s32.totalorder %s704_s10, %s704_s10 }
  0x13   :  { %p711_p8 = por %p710_p7, %p709_p6 }
  0x15   :  { %p712_p9 = pnand %p711_p8, %p705_p5 }
  0x17   :  { %715 = shalt.err (!%p712_p9)
}
  0x18   :  { %41 = dma.hbm_to_vmem [thread:$0]  %s893_s4, 6144, %s36_s9, [#allocation12], %s767_s27, %s767_s27, %s768_s28  }
  0x19   :  { %758 = dma.done.wait [#allocation9], 6144  }
  0x1a   :  { %759 = vsyncadd [#allocation9], 4294961152 }
  0x1b   :  { %760 = dma.done.wait [#allocation12], 6144  }
  0x1c   :  { %761 = vsyncadd [#allocation12], 4294961152  ;;  %s554_s14 = sshll.u32 %s889_s0, 4  ;;  %s770_s18 = smov [#allocation2]   ;;  %v771_v0 = vmov 0.0  }
  0x1d   :  { %s54_s17 = scalar_lea.hbm %s890_s1, %s554_s14  ;;  %s62_s19 = sshll.u32 %s770_s18, 4  ;;  %66 = vst [vmem:[#allocation13] sm:$0xff] %v771_v0  ;;  %s63_s19 = int_to_ptr.vmem [resolvable:$true] %s62_s19 }
  0x1e   :  { %s716_s20 = scalar_lea.hbm %s54_s17, 16  ;;  %s718_s22 = scalar_lea.hbm %s890_s1, 256 }
  0x1f   :  { %p717_p10 = scmp.ne.s32.totalorder %s54_s17, %s716_s20  ;;  %p719_p11 = scmp.lt.s32.totalorder %s54_s17, %s890_s1 }
  0x20   :  { %p720_p12 = scmp.lt.s32.totalorder %s718_s22, %s716_s20 }
  0x22   :  { %p721_p13 = por %p720_p12, %p719_p11 }
  0x24   :  { %p722_p0 = pnand %p721_p13, %p717_p10 }
  0x26   :  { %725 = shalt.err (!%p722_p0)  }
  0x27   :  { %s726_s0 = scalar_lea.vmem %s63_s19, 16  ;;  %s730_s25 = scalar_lea.vmem %s63_s19, 128 }
  0x28   :  { %p727_p1 = scmp.ne.s32.totalorder %s63_s19, %s726_s0  ;;  %p731_p2 = scmp.lt.s32.totalorder %s63_s19, %s63_s19 }
  0x29   :  { %p732_p3 = scmp.lt.s32.totalorder %s730_s25, %s726_s0 }
  0x2b   :  { %p733_p4 = por %p732_p3, %p731_p2 }
  0x2d   :  { %p734_p5 = pnand %p733_p4, %p727_p1 }
  0x2f   :  { %737 = shalt.err (!%p734_p5)  }
  0x30   :  { %65 = dma.hbm_to_vmem [thread:$0]  %s54_s17, 16, %s63_s19, [#allocation5] }
  0x31   :  { %762 = dma.done.wait [#allocation5], 16 }
  0x32   :  { %763 = vsyncadd [#allocation5], 4294967280  ;;  %591 = vmatprep.subr.mxu1 %v771_v0  ;;  %201 = vmatprep.mubr.f32.mxu0 %v771_v0  ;;  %vm772_vm0 = vmmov 0   ;;  %v118_v1 = vld [vmem:[#allocation8 + $0x170] sm:$0xff]  ;;  %v117_v2 = vld [vmem:[#allocation8 + $0x168] sm:$0xff] }
  0x33   :  { %623 = vmatprep.mubr.msk.f32.mxu1 %vm772_vm0, %v771_v0  ;;  %v115_v3 = vld [vmem:[#allocation8 + $0x158] sm:$0xff]  ;;  %137 = vmatprep.subr.mxu0 %v118_v1  ;;  %v114_v4 = vld [vmem:[#allocation8 + $0x150] sm:$0xff]  ;;  %v112_v6 = vld [vmem:[#allocation8 + $0x140] sm:$0xff] }
  0x34   :  { %v119_v5 = vld [vmem:[#allocation8 + $0x178] sm:$0xff]  ;;  %138 = vmatpush1.msra.mxu0 %v117_v2  ;;  %v116_v7 = vld [vmem:[#allocation8 + $0x160] sm:$0xff]  ;;  %v113_v9 = vld [vmem:[#allocation8 + $0x148] sm:$0xff] }
  0x35   :  { %592 = vmatpush3.msra.mxu1 %v119_v5  ;;  %139 = vmatprep.subr.mxu0 %v115_v3  ;;  %v111_v8 = vld [vmem:[#allocation8 + $0x138] sm:$0xff]  ;;  %v109_v10 = vld [vmem:[#allocation8 + $0x128] sm:$0xff]  ;;  %v108_v11 = vld [vmem:[#allocation8 + $0x120] sm:$0xff] }
  0x36   :  { %593 = vmatprep.subr.mxu1 %v771_v0  ;;  %140 = vmatpush1.msra.mxu0 %v114_v4  ;;  %v110_v12 = vld [vmem:[#allocation8 + $0x130] sm:$0xff]  ;;  %v105_v14 = vld [vmem:[#allocation8 + $0x108] sm:$0xff]  ;;  %v107_v15 = vld [vmem:[#allocation8 + $0x118] sm:$0xff] }
  0x37   :  { %594 = vmatpush3.msra.mxu1 %v116_v7  ;;  %141 = vmatprep.subr.mxu0 %v112_v6  ;;  %v106_v13 = vld [vmem:[#allocation8 + $0x110] sm:$0xff]  ;;  %v103_v16 = vld [vmem:[#allocation8 + $0xf8] sm:$0xff]  ;;  %v104_v18 = vld [vmem:[#allocation8 + $0x100] sm:$0xff] }
  0x38   :  { %595 = vmatprep.subr.mxu1 %v771_v0  ;;  %142 = vmatpush1.msra.mxu0 %v111_v8  ;;  %v102_v17 = vld [vmem:[#allocation8 + $0xf0] sm:$0xff]  ;;  %v100_v19 = vld [vmem:[#allocation8 + $0xe0] sm:$0xff]  ;;  %v99_v20 = vld [vmem:[#allocation8 + $0xd8] sm:$0xff] }
  0x39   :  { %596 = vmatpush3.msra.mxu1 %v113_v9  ;;  %143 = vmatprep.subr.mxu0 %v109_v10  ;;  %v101_v21 = vld [vmem:[#allocation8 + $0xe8] sm:$0xff]  ;;  %v96_v23 = vld [vmem:[#allocation8 + $0xc0] sm:$0xff]  ;;  %v98_v24 = vld [vmem:[#allocation8 + $0xd0] sm:$0xff] }
  0x3a   :  { %597 = vmatprep.subr.mxu1 %v771_v0  ;;  %144 = vmatpush1.msra.mxu0 %v108_v11  ;;  %v97_v22 = vld [vmem:[#allocation8 + $0xc8] sm:$0xff]  ;;  %v94_v25 = vld [vmem:[#allocation8 + $0xb0] sm:$0xff]  ;;  %v95_v27 = vld [vmem:[#allocation8 + $0xb8] sm:$0xff] }
  0x3b   :  { %598 = vmatpush3.msra.mxu1 %v110_v12  ;;  %145 = vmatprep.subr.mxu0 %v106_v13  ;;  %v93_v26 = vld [vmem:[#allocation8 + $0xa8] sm:$0xff]  ;;  %v91_v28 = vld [vmem:[#allocation8 + $0x98] sm:$0xff]  ;;  %v90_v29 = vld [vmem:[#allocation8 + $0x90] sm:$0xff] }
  0x3c   :  { %599 = vmatprep.subr.mxu1 %v771_v0  ;;  %146 = vmatpush1.msra.mxu0 %v105_v14  ;;  %v92_v30 = vld [vmem:[#allocation8 + $0xa0] sm:$0xff]  ;;  %v87_v32 = vld [vmem:[#allocation8 + $0x78] sm:$0xff]  ;;  %v89_v33 = vld [vmem:[#allocation8 + $0x88] sm:$0xff] }
  0x3d   :  { %600 = vmatpush3.msra.mxu1 %v107_v15  ;;  %147 = vmatprep.subr.mxu0 %v103_v16  ;;  %v88_v31 = vld [vmem:[#allocation8 + $0x80] sm:$0xff]  ;;  %v85_v34 = vld [vmem:[#allocation8 + $0x68] sm:$0xff]  ;;  %v86_v36 = vld [vmem:[#allocation8 + $0x70] sm:$0xff] }
  0x3e   :  { %601 = vmatprep.subr.mxu1 %v771_v0  ;;  %148 = vmatpush1.msra.mxu0 %v102_v17  ;;  %v84_v35 = vld [vmem:[#allocation8 + $0x60] sm:$0xff]  ;;  %v82_v37 = vld [vmem:[#allocation8 + $0x50] sm:$0xff]  ;;  %v81_v38 = vld [vmem:[#allocation8 + $0x48] sm:$0xff] }
  0x3f   :  { %602 = vmatpush3.msra.mxu1 %v104_v18  ;;  %149 = vmatprep.subr.mxu0 %v100_v19  ;;  %v83_v39 = vld [vmem:[#allocation8 + $0x58] sm:$0xff]  ;;  %v78_v41 = vld [vmem:[#allocation8 + $0x30] sm:$0xff]  ;;  %v80_v42 = vld [vmem:[#allocation8 + $0x40] sm:$0xff] }
  0x40   :  { %603 = vmatprep.subr.mxu1 %v771_v0  ;;  %150 = vmatpush1.msra.mxu0 %v99_v20  ;;  %v79_v40 = vld [vmem:[#allocation8 + $0x38] sm:$0xff]  ;;  %v76_v43 = vld [vmem:[#allocation8 + $0x20] sm:$0xff]  ;;  %v77_v45 = vld [vmem:[#allocation8 + $0x28] sm:$0xff] }
  0x41   :  { %604 = vmatpush3.msra.mxu1 %v101_v21  ;;  %151 = vmatprep.subr.mxu0 %v97_v22  ;;  %v75_v44 = vld [vmem:[#allocation8 + $0x18] sm:$0xff]  ;;  %v73_v47 = vld [vmem:[#allocation8 + $0x8] sm:$0xff]  ;;  %v72_v48 = vld [vmem:[#allocation8] sm:$0xff] }
  0x42   :  { %605 = vmatprep.subr.mxu1 %v771_v0  ;;  %152 = vmatpush1.msra.mxu0 %v96_v23  ;;  %v281_v46 = vld [vmem:[%s891_s2] sm:$0x1]  ;;  %v74_v49 = vld [vmem:[#allocation8 + $0x10] sm:$0xff]  ;;  %v330_v52 = vld [vmem:[#allocation11 + $0x168] sm:$0xff] }
  0x43   :  { %606 = vmatpush3.msra.mxu1 %v98_v24  ;;  %153 = vmatprep.subr.mxu0 %v94_v25  ;;  %282 = vst [vmem:[#allocation4] sm:$0x1] %v281_v46  ;;  %v71_v50 = vld [vmem:[#allocation2] sm:$0xff]  ;;  %v331_v51 = vld [vmem:[#allocation11 + $0x170] sm:$0xff]  ;;  %v322_v58 = vld [vmem:[#allocation11 + $0x128] sm:$0xff] }
  0x44   :  { %607 = vmatprep.subr.mxu1 %v771_v0  ;;  %154 = vmatpush1.msra.mxu0 %v93_v26  ;;  %v328_v53 = vld [vmem:[#allocation11 + $0x158] sm:$0xff]  ;;  %v327_v54 = vld [vmem:[#allocation11 + $0x150] sm:$0xff]  ;;  %v325_v55 = vld [vmem:[#allocation11 + $0x140] sm:$0xff] }
  0x45   :  { %608 = vmatpush3.msra.mxu1 %v95_v27  ;;  %155 = vmatprep.subr.mxu0 %v91_v28  ;;  %v332_v56 = vld [vmem:[#allocation11 + $0x178] sm:$0xff]  ;;  %v329_v59 = vld [vmem:[#allocation11 + $0x160] sm:$0xff]  ;;  %v319_v61 = vld [vmem:[#allocation11 + $0x110] sm:$0xff] }
  0x46   :  { %609 = vmatprep.subr.mxu1 %v771_v0  ;;  %156 = vmatpush1.msra.mxu0 %v90_v29  ;;  %v324_v57 = vld [vmem:[#allocation11 + $0x138] sm:$0xff]  ;;  %v321_v60 = vld [vmem:[#allocation11 + $0x120] sm:$0xff]  ;;  %v326_v62 = vld [vmem:[#allocation11 + $0x148] sm:$0xff] }
  0x47   :  { %610 = vmatpush3.msra.mxu1 %v92_v30  ;;  %157 = vmatprep.subr.mxu0 %v88_v31  ;;  %v318_v63 = vld [vmem:[#allocation11 + $0x108] sm:$0xff]  ;;  %v316_v1 = vld [vmem:[#allocation11 + $0xf8] sm:$0xff]  ;;  %v323_v2 = vld [vmem:[#allocation11 + $0x130] sm:$0xff] }
  0x48   :  { %611 = vmatprep.subr.mxu1 %v771_v0  ;;  %158 = vmatpush1.msra.mxu0 %v87_v32  ;;  %v315_v3 = vld [vmem:[#allocation11 + $0xf0] sm:$0xff]  ;;  %v313_v4 = vld [vmem:[#allocation11 + $0xe0] sm:$0xff]  ;;  %v320_v5 = vld [vmem:[#allocation11 + $0x118] sm:$0xff] }
  0x49   :  { %612 = vmatpush3.msra.mxu1 %v89_v33  ;;  %159 = vmatprep.subr.mxu0 %v85_v34  ;;  %v312_v6 = vld [vmem:[#allocation11 + $0xd8] sm:$0xff]  ;;  %v310_v7 = vld [vmem:[#allocation11 + $0xc8] sm:$0xff]  ;;  %v317_v8 = vld [vmem:[#allocation11 + $0x100] sm:$0xff] }
  0x4a   :  { %613 = vmatprep.subr.mxu1 %v771_v0  ;;  %160 = vmatpush1.msra.mxu0 %v84_v35  ;;  %v309_v9 = vld [vmem:[#allocation11 + $0xc0] sm:$0xff]  ;;  %v307_v10 = vld [vmem:[#allocation11 + $0xb0] sm:$0xff]  ;;  %v314_v11 = vld [vmem:[#allocation11 + $0xe8] sm:$0xff] }
  0x4b   :  { %614 = vmatpush3.msra.mxu1 %v86_v36  ;;  %161 = vmatprep.subr.mxu0 %v82_v37  ;;  %v306_v12 = vld [vmem:[#allocation11 + $0xa8] sm:$0xff]  ;;  %v304_v13 = vld [vmem:[#allocation11 + $0x98] sm:$0xff]  ;;  %v311_v14 = vld [vmem:[#allocation11 + $0xd0] sm:$0xff]  ;;  %v122_v37 = vlaneseq }
  0x4c   :  { %615 = vmatprep.subr.mxu1 %v771_v0  ;;  %162 = vmatpush1.msra.mxu0 %v81_v38  ;;  %v303_v15 = vld [vmem:[#allocation11 + $0x90] sm:$0xff]  ;;  %v301_v16 = vld [vmem:[#allocation11 + $0x80] sm:$0xff]  ;;  %v308_v17 = vld [vmem:[#allocation11 + $0xb8] sm:$0xff] }
  0x4d   :  { %616 = vmatpush3.msra.mxu1 %v83_v39  ;;  %163 = vmatprep.subr.mxu0 %v79_v40  ;;  %v300_v18 = vld [vmem:[#allocation11 + $0x78] sm:$0xff]  ;;  %v298_v19 = vld [vmem:[#allocation11 + $0x68] sm:$0xff]  ;;  %v305_v20 = vld [vmem:[#allocation11 + $0xa0] sm:$0xff]  ;;  %v123_v38 = vshrl.u32 %v122_v37, 7 }
  0x4e   :  { %617 = vmatprep.subr.mxu1 %v771_v0  ;;  %164 = vmatpush1.msra.mxu0 %v78_v41  ;;  %v297_v21 = vld [vmem:[#allocation11 + $0x60] sm:$0xff]  ;;  %v295_v22 = vld [vmem:[#allocation11 + $0x50] sm:$0xff]  ;;  %v302_v23 = vld [vmem:[#allocation11 + $0x88] sm:$0xff] }
  0x4f   :  { %618 = vmatpush3.msra.mxu1 %v80_v42  ;;  %165 = vmatprep.subr.mxu0 %v76_v43  ;;  %v294_v24 = vld [vmem:[#allocation11 + $0x48] sm:$0xff]  ;;  %v292_v25 = vld [vmem:[#allocation11 + $0x38] sm:$0xff]  ;;  %v299_v26 = vld [vmem:[#allocation11 + $0x70] sm:$0xff]  ;;  %v124_v39 = vsub.s32 0, %v123_v38  ;;  %v132_v41 = vsub.s32 2, %v123_v38  ;;  %v128_v42 = vsub.s32 1, %v123_v38 }
  0x50   :  { %619 = vmatprep.subr.mxu1 %v771_v0  ;;  %166 = vmatpush1.msra.mxu0 %v75_v44  ;;  %v291_v27 = vld [vmem:[#allocation11 + $0x30] sm:$0xff]  ;;  %v289_v28 = vld [vmem:[#allocation11 + $0x20] sm:$0xff]  ;;  %v296_v29 = vld [vmem:[#allocation11 + $0x58] sm:$0xff] }
  0x51   :  { %620 = vmatpush3.msra.mxu1 %v77_v45  ;;  %167 = vmatprep.subr.mxu0 %v73_v47  ;;  %v288_v30 = vld [vmem:[#allocation11 + $0x18] sm:$0xff]  ;;  %v286_v31 = vld [vmem:[#allocation11 + $0x8] sm:$0xff]  ;;  %v293_v32 = vld [vmem:[#allocation11 + $0x40] sm:$0xff] }
  0x52   :  { %621 = vmatprep.subr.mxu1 %v771_v0  ;;  %168 = vmatpush1.msra.mxu0 %v72_v48  ;;  %v285_v33 = vld [vmem:[#allocation11] sm:$0xff]  ;;  %v870_v34 = vld [vmem:[#allocation4] sm:$0x1]  ;;  %v290_v35 = vld [vmem:[#allocation11 + $0x28] sm:$0xff] }
  0x53   :  { %622 = vmatpush3.msra.mxu1 %v74_v49  ;;  %202 = vmatmul.mubr.f32.vlgmr.msra.gmra.mxu0 %v71_v50  ;;  %v287_v36 = vld [vmem:[#allocation11 + $0x10] sm:$0xff]  ;;  %v120_v40 = vld [vmem:[%s894_s5] sm:$0x7]  ;;  %s774_s5 = smov [#allocation13]  }
  0x54   :  { %350 = vmatprep.subr.mxu0 %v331_v51  ;;  %624 = vmatmul.mubr.f32.vlgmr.msra.gmra.mxu1 %v71_v50  ;;  %v125_v43 = vrot.slane %v120_v40, %v124_v39  ;;  %v133_v44 = vrot.slane %v120_v40, %v132_v41  ;;  %v129_v45 = vrot.slane %v120_v40, %v128_v42 }
  0x55   :  { %351 = vmatpush1.msra.mxu0 %v330_v52  ;;  %414 = vmatprep.mubr.f32.mxu0 %v771_v0  ;;  %v773_v52 = vmov 1966171168  }
  0x56   :  { %352 = vmatprep.subr.mxu0 %v328_v53  ;;  %626 = vmatprep.subr.mxu1 %v771_v0  ;;  %v495_v53 = vunpack.c.l.s4 %v773_v52 }
  0x57   :  { %353 = vmatpush1.msra.mxu0 %v327_v54  ;;  %627 = vmatpush3.msra.mxu1 %v332_v56  ;;  %v333_v54 = vld [vmem:[%s895_s6] sm:$0x7]  ;;  %s536_s6 = sshll.u32 %s774_s5, 4  ;;  %s537_s6 = int_to_ptr.vmem [resolvable:$true] %s536_s6 }
  0x58   :  { %354 = vmatprep.subr.mxu0 %v325_v55  ;;  %628 = vmatprep.subr.mxu1 %v771_v0  ;;  %v338_v55 = vrot.slane %v333_v54, %v124_v39  ;;  %v342_v56 = vrot.slane %v333_v54, %v128_v42  ;;  %s738_s30 = scalar_lea.vmem %s537_s6, 128  ;;  %p743_p7 = scmp.lt.s32.totalorder %s537_s6, %s537_s6 }
  0x59   :  { %355 = vmatpush1.msra.mxu0 %v324_v57  ;;  %629 = vmatpush3.msra.mxu1 %v329_v59  ;;  %v496_v57 = vunpack.c.0.s8 %v495_v53  ;;  %p739_p6 = scmp.ne.s32.totalorder %s537_s6, %s738_s30  ;;  %p744_p8 = scmp.lt.s32.totalorder %s738_s30, %s738_s30 }
  0x5a   :  { %356 = vmatprep.subr.mxu0 %v322_v58  ;;  %630 = vmatprep.subr.mxu1 %v771_v0 }
  0x5b   :  { %357 = vmatpush1.msra.mxu0 %v321_v60  ;;  %631 = vmatpush3.msra.mxu1 %v326_v62  ;;  %v499_v62 = vsub.s32 %v496_v57, %v123_v38  ;;  %p745_p9 = por %p744_p8, %p743_p7 }
  0x5c   :  { %358 = vmatprep.subr.mxu0 %v319_v61  ;;  %632 = vmatprep.subr.mxu1 %v771_v0 }
  0x5d   :  { %359 = vmatpush1.msra.mxu0 %v318_v63  ;;  %633 = vmatpush3.msra.mxu1 %v323_v2  ;;  %p746_p10 = pnand %p745_p9, %p739_p6 }
  0x5e   :  { %360 = vmatprep.subr.mxu0 %v316_v1  ;;  %634 = vmatprep.subr.mxu1 %v771_v0 }
  0x5f   :  { %361 = vmatpush1.msra.mxu0 %v315_v3  ;;  %635 = vmatpush3.msra.mxu1 %v320_v5 }
  0x60   :  { %362 = vmatprep.subr.mxu0 %v313_v4  ;;  %636 = vmatprep.subr.mxu1 %v771_v0 }
  0x61   :  { %363 = vmatpush1.msra.mxu0 %v312_v6  ;;  %637 = vmatpush3.msra.mxu1 %v317_v8 }
  0x62   :  { %364 = vmatprep.subr.mxu0 %v310_v7  ;;  %638 = vmatprep.subr.mxu1 %v771_v0 }
  0x63   :  { %365 = vmatpush1.msra.mxu0 %v309_v9  ;;  %639 = vmatpush3.msra.mxu1 %v314_v11 }
  0x64   :  { %366 = vmatprep.subr.mxu0 %v307_v10  ;;  %640 = vmatprep.subr.mxu1 %v771_v0  ;;  %v346_v10 = vrot.slane %v333_v54, %v132_v41 }
  0x65   :  { %367 = vmatpush1.msra.mxu0 %v306_v12  ;;  %641 = vmatpush3.msra.mxu1 %v311_v14 }
  0x66   :  { %368 = vmatprep.subr.mxu0 %v304_v13  ;;  %642 = vmatprep.subr.mxu1 %v771_v0 }
  0x67   :  { %369 = vmatpush1.msra.mxu0 %v303_v15  ;;  %643 = vmatpush3.msra.mxu1 %v308_v17 }
  0x68   :  { %370 = vmatprep.subr.mxu0 %v301_v16  ;;  %644 = vmatprep.subr.mxu1 %v771_v0 }
  0x69   :  { %371 = vmatpush1.msra.mxu0 %v300_v18  ;;  %645 = vmatpush3.msra.mxu1 %v305_v20 }
  0x6a   :  { %372 = vmatprep.subr.mxu0 %v298_v19  ;;  %646 = vmatprep.subr.mxu1 %v771_v0 }
  0x6b   :  { %373 = vmatpush1.msra.mxu0 %v297_v21  ;;  %647 = vmatpush3.msra.mxu1 %v302_v23 }
  0x6c   :  { %374 = vmatprep.subr.mxu0 %v295_v22  ;;  %648 = vmatprep.subr.mxu1 %v771_v0 }
  0x6d   :  { %375 = vmatpush1.msra.mxu0 %v294_v24  ;;  %649 = vmatpush3.msra.mxu1 %v299_v26 }
  0x6e   :  { %376 = vmatprep.subr.mxu0 %v292_v25  ;;  %650 = vmatprep.subr.mxu1 %v771_v0 }
  0x6f   :  { %377 = vmatpush1.msra.mxu0 %v291_v27  ;;  %651 = vmatpush3.msra.mxu1 %v296_v29 }
  0x70   :  { %378 = vmatprep.subr.mxu0 %v289_v28  ;;  %652 = vmatprep.subr.mxu1 %v771_v0 }
  0x71   :  { %379 = vmatpush1.msra.mxu0 %v288_v30  ;;  %653 = vmatpush3.msra.mxu1 %v293_v32 }
  0x72   :  { %380 = vmatprep.subr.mxu0 %v286_v31  ;;  %654 = vmatprep.subr.mxu1 %v771_v0 }
  0x73   :  { %381 = vmatpush1.msra.mxu0 %v285_v33  ;;  %655 = vmatpush3.msra.mxu1 %v290_v35 }
  0x74   :  { %415 = vmatmul.mubr.f32.vlgmr.msra.gmra.mxu0 %v870_v34  ;;  %656 = vmatprep.subr.mxu1 %v771_v0 }
  0x75   :  { %658 = vmatprep.mubr.msk.f32.mxu1 %vm772_vm0, %v771_v0  ;;  %657 = vmatpush3.msra.mxu1 %v287_v36 }
  0x76   :  { %659 = vmatmul.mubr.f32.vlgmr.msra.gmra.mxu1 %v870_v34 }
 0x113   :  { %v203_v46 = vpop.f32.mrf.mxu0 }
 0x114   :  { %v204_v47 = vadd.f32 %v203_v46, %v125_v43  ;;  %v274_v48 = vpop.f32.mrf.mxu1 }
 0x115   :  { %v205_v49 = vpop.f32.mrf.mxu0  ;;  %v275_v0 = vadd.f32 %v274_v48, %v133_v44 }
 0x116   :  { %278 = vst [vmem:[#allocation3] sm:$0xff] %v204_v47  ;;  %v206_v50 = vadd.f32 %v205_v49, %v129_v45  ;;  %v625_v51 = vpop.f32.mrf.mxu1 }
 0x117   :  { %280 = vst [vmem:[#allocation3 + $0x10] sm:$0xff] %v275_v0 }
 0x118   :  { %279 = vst [vmem:[#allocation3 + $0x8] sm:$0xff] %v206_v50 }
 0x11f   :  { %v284_v5 = vld [vmem:[#allocation3] ss:$8 sm:$0x7] }
 0x120   :  { %v518_v14 = vrot.slane %v284_v5, 2 }
 0x134   :  { %v416_v58 = vpop.f32.mrf.mxu0 }
 0x135   :  { %v417_v60 = vadd.f32 %v416_v58, %v338_v55 }
 0x136   :  { %v418_v59 = vpop.f32.mrf.mxu0  ;;  %v487_v63 = vpop.f32.mrf.mxu1 }
 0x137   :  { %v419_v61 = vadd.f32 %v418_v59, %v342_v56  ;;  %v488_v11 = vadd.f32 %v487_v63, %v346_v10 }
 0x138   :  { %v660_v2 = vpop.f32.mrf.mxu1 }
 0x139   :  { %v493_v1 = vcombine.low %v417_v60, %v419_v61 }
 0x13b   :  { %v500_v3 = vrot.slane %v493_v1, %v499_v62 }
 0x13d   :  { %v507_v4 = vrot.slane %v500_v3, %v499_v62 }
 0x13f   :  { %v509_v6 = vadd.f32 %v507_v4, %v284_v5 }
 0x141   :  { %v555_v7 = vmul.f32 -1.442695, %v509_v6 }
 0x143   :  { %670 = vpow2.f32 %v555_v7 }
 0x150   :  { %v671_v8 = vpop.eup %670 }
 0x151   :  { %v513_v9 = vadd.f32 1.0, %v671_v8 }
 0x153   :  { %672 = vrcp.f32 %v513_v9 }
 0x160   :  { %v673_v12 = vpop.eup %672 }
 0x161   :  { %v516_v13 = vmul.f32 %v673_v12, %v488_v11  ;;  %v524_v18 = vrot.slane %v673_v12, 1 }
 0x163   :  { %v520_v15 = vadd.f32 %v518_v14, %v516_v13 }
 0x165   :  { %674 = vtanh.f32 %v520_v15 }
 0x172   :  { %v675_v16 = vpop.eup %674 }
 0x173   :  { %v522_v17 = vsub.f32 %v870_v34, %v675_v16 }
 0x175   :  { %v526_v19 = vmul.f32 %v524_v18, %v522_v17 }
 0x177   :  { %v527_v20 = vadd.f32 %v675_v16, %v526_v19 }
 0x179   :  { %528 = vst [vmem:[#allocation4] sm:$0x1] %v527_v20  ;;  %529 = vst [vmem:[#allocation13] sm:$0x1] %v527_v20 }
 0x17a   :  { %749 = shalt.err (!%p746_p10)
}
 0x17b   :  { %539 = dma.vmem_to_hbm [thread:$0]  %s537_s6, 128, %s896_s7, [#allocation10]  }
 0x17c   :  { %764 = dma.done.wait [#allocation10], 128  }
 0x17d   :  { %765 = vsyncadd [#allocation10], 4294967168 }
 0x17e   :  { %543 = vsyncpa [#allocation9], 1 }
 0x17f   :  { %544 = vsyncpa [#allocation12], 1 }
 0x180   :  { %545 = vsyncpa [#allocation10], 1 }
 0x181   :  { %546 = vsyncmov [#allocation5] }
 0x184   :  { %s547_s10 = vpop.sfrf %546 }
 0x185   :  { %p556_p11 = scmp.ne.s32.totalorder %s547_s10, 0 }
 0x187   :  { %551 = shalt.err (%p556_p11)  }

</bundles_post_ra>
